<compile_context>
chip_gen: v5e
topology: v5e:2x2
jax: 0.10.0
libtpu: 0.0.40
codegen_flags: <defaults>
</compile_context>

<pallas_src>
import functools

import jax
import jax.numpy as jnp
from jax.experimental import pallas as pl
from jax.experimental.pallas import tpu as pltpu


def _round_up(n, m):
    return ((n + m - 1) // m) * m


def _domain_classifier_kernel(num_classes,
                              x_ref, w1_ref, b1_ref, w2_ref, b2_ref,
                              w3_ref, b3_ref, o_ref):
    mm_dtype = w1_ref.dtype  # bf16 (or f32 if use_bf16=False)

    # Layer 1: (TB, D) @ (D, 512) + (1, 512) -> relu      (f32 accumulate on MXU)
    h1 = jnp.dot(x_ref[...], w1_ref[...], preferred_element_type=jnp.float32)
    h1 = jnp.maximum(h1 + b1_ref[...], 0.0)

    # Layer 2: (TB, 512) @ (512, 256) + (1, 256) -> relu
    h2 = jnp.dot(h1.astype(mm_dtype), w2_ref[...], preferred_element_type=jnp.float32)
    h2 = jnp.maximum(h2 + b2_ref[...], 0.0)

    # Layer 3: (TB, 256) @ (256, 128) + (1, 128)   (class dim zero-padded 2 -> 128)
    logits = jnp.dot(h2.astype(mm_dtype), w3_ref[...], preferred_element_type=jnp.float32)
    logits = logits + b3_ref[...]

    # Mask padded class lanes to -inf so they don't perturb the softmax reductions.
    lane = jax.lax.broadcasted_iota(jnp.int32, logits.shape, 1)
    logits = jnp.where(lane < num_classes, logits, -jnp.inf)

    # log_softmax over the class axis (per-row max-shift + log-sum-exp, all f32).
    m = jnp.max(logits, axis=1, keepdims=True)
    shifted = logits - m
    lse = jnp.log(jnp.sum(jnp.exp(shifted), axis=1, keepdims=True))
    o_ref[...] = (shifted - lse).astype(o_ref.dtype)


def domain_classifier_forward(x, params, alpha=1.0, *, batch_tile=512, use_bf16=True):
    """Forward pass of DomainClassifier. `alpha` only matters for backward (GRL)."""
    del alpha  # identity in forward
    w1, b1, w2, b2, w3, b3 = params
    B, D = x.shape
    H1 = w1.shape[1]   # 512
    H2 = w2.shape[1]   # 256
    C = w3.shape[1]    # 2
    CP = 128           # lane-dense padded class dim

    # Batch tile: multiple of 8 (f32 sublane), capped at batch_tile. Pad B up to a
    # whole number of tiles (zero rows; clipped from the output below).
    TB = min(batch_tile, _round_up(B, 8))
    B_pad = _round_up(B, TB)

    xp = x if B_pad == B else jnp.pad(x, ((0, B_pad - B), (0, 0)))

    mm_dtype = jnp.bfloat16 if use_bf16 else x.dtype
    xp = xp.astype(mm_dtype)
    w1m = w1.astype(mm_dtype)
    w2m = w2.astype(mm_dtype)
    w3m = jnp.pad(w3, ((0, 0), (0, CP - C))).astype(mm_dtype)

    # Biases as (1, N) f32 rows; padded b3 lanes are zero (masked to -inf in-kernel).
    b1r = b1.reshape(1, H1).astype(jnp.float32)
    b2r = b2.reshape(1, H2).astype(jnp.float32)
    b3r = jnp.pad(b3, (0, CP - C)).reshape(1, CP).astype(jnp.float32)

    grid = (B_pad // TB,)
    streaming = lambda shape: pl.BlockSpec(shape, lambda i: (i, 0))   # tiles along batch
    resident = lambda shape: pl.BlockSpec(shape, lambda i: (0, 0))    # loaded once, VMEM-resident

    out = pl.pallas_call(
        functools.partial(_domain_classifier_kernel, C),
        out_shape=jax.ShapeDtypeStruct((B_pad, CP), jnp.float32),
        grid=grid,
        in_specs=[
            streaming((TB, D)),
            resident((D, H1)), resident((1, H1)),
            resident((H1, H2)), resident((1, H2)),
            resident((H2, CP)), resident((1, CP)),
        ],
        out_specs=streaming((TB, CP)),
        compiler_params=pltpu.CompilerParams(
            dimension_semantics=("parallel",),
            vmem_limit_bytes=32 << 20,
        ),
    )(xp, w1m, b1r, w2m, b2r, w3m, b3r)

    return out[:B, :C]


def init_params(key, input_dim):
    """Deterministic init mimicking nn.Linear default (uniform +/- 1/sqrt(fan_in))."""
    dims = [(input_dim, 512), (512, 256), (256, 2)]
    params = []
    for (fan_in, fan_out) in dims:
        key, kw, kb = jax.random.split(key, 3)
        bound = 1.0 / jnp.sqrt(fan_in)
        w = jax.random.uniform(kw, (fan_in, fan_out), jnp.float32, -bound, bound)
        b = jax.random.uniform(kb, (fan_out,), jnp.float32, -bound, bound)
        params += [w, b]
    return tuple(params)


def reference_forward(x, params, use_bf16=True):
    """Pure-JAX reference with the same bf16-operand / f32-accumulate casting as the kernel."""
    w1, b1, w2, b2, w3, b3 = params
    cd = jnp.bfloat16 if use_bf16 else x.dtype
    h1 = jnp.maximum(
        jnp.dot(x.astype(cd), w1.astype(cd), preferred_element_type=jnp.float32) + b1, 0.0)
    h2 = jnp.maximum(
        jnp.dot(h1.astype(cd), w2.astype(cd), preferred_element_type=jnp.float32) + b2, 0.0)
    logits = jnp.dot(h2.astype(cd), w3.astype(cd), preferred_element_type=jnp.float32) + b3
    return jax.nn.log_softmax(logits, axis=1)


def reference_forward_f32(x, params):
    w1, b1, w2, b2, w3, b3 = params
    h1 = jnp.maximum(x @ w1 + b1, 0.0)
    h2 = jnp.maximum(h1 @ w2 + b2, 0.0)
    return jax.nn.log_softmax(h2 @ w3 + b3, axis=1)


if __name__ == "__main__":
    key = jax.random.PRNGKey(0)
    key, kx, kp = jax.random.split(key, 3)

    B, input_dim = 8, 32
    x = jax.random.normal(kx, (B, input_dim), jnp.float32)
    params = init_params(kp, input_dim)

    out = domain_classifier_forward(x, params, alpha=1.0)
    out = jax.block_until_ready(out)
    assert out.shape == (B, 2)

    # Tight check against the cast-matched reference (same bf16/f32 mixed precision).
    ref = reference_forward(x, params, use_bf16=True)
    assert jnp.allclose(out, ref, atol=1e-4, rtol=1e-4), "mismatch vs bf16-matched reference"

    # Loose check against full-f32 module semantics (bf16 matmul operands only).
    ref32 = reference_forward_f32(x, params)
    assert jnp.allclose(out, ref32, atol=5e-2, rtol=5e-2), "mismatch vs f32 reference"

    # Also exercise a non-tile-aligned batch to validate pad/clip handling.
    B2 = 13
    x2 = jax.random.normal(kx, (B2, input_dim), jnp.float32)
    out2 = jax.block_until_ready(domain_classifier_forward(x2, params))
    ref2 = reference_forward(x2, params, use_bf16=True)
    assert out2.shape == (B2, 2)
    assert jnp.allclose(out2, ref2, atol=1e-4, rtol=1e-4), "mismatch on ragged batch"

    print("KERNEL_OK")
</pallas_src>

<mosaic_0001>
module attributes {stable_mosaic.version = 11 : i64} {
  func.func @_domain_classifier_kernel(%arg0: i32, %arg1: memref<8x32xbf16, #tpu.memory_space<vmem>>, %arg2: memref<32x512xbf16, #tpu.memory_space<vmem>>, %arg3: memref<1x512xf32, #tpu.memory_space<vmem>>, %arg4: memref<512x256xbf16, #tpu.memory_space<vmem>>, %arg5: memref<1x256xf32, #tpu.memory_space<vmem>>, %arg6: memref<256x128xbf16, #tpu.memory_space<vmem>>, %arg7: memref<1x128xf32, #tpu.memory_space<vmem>>, %arg8: memref<8x128xf32, #tpu.memory_space<vmem>>) attributes {dimension_semantics = [#tpu.dimension_semantics<parallel>], iteration_bounds = array<i64: 1>, scalar_prefetch = 0 : i64, scratch_operands = 0 : i64, tpu.core_type = #tpu.core_type<tc>, window_params = [{transform_indices = @transform_0, window_bounds = array<i64: 8, 32>}, {pipeline_mode = #tpu.pipeline_mode<synchronous>, transform_indices = @transform_1, window_bounds = array<i64: 32, 512>}, {pipeline_mode = #tpu.pipeline_mode<synchronous>, transform_indices = @transform_2, window_bounds = array<i64: 1, 512>}, {pipeline_mode = #tpu.pipeline_mode<synchronous>, transform_indices = @transform_3, window_bounds = array<i64: 512, 256>}, {pipeline_mode = #tpu.pipeline_mode<synchronous>, transform_indices = @transform_4, window_bounds = array<i64: 1, 256>}, {pipeline_mode = #tpu.pipeline_mode<synchronous>, transform_indices = @transform_5, window_bounds = array<i64: 256, 128>}, {pipeline_mode = #tpu.pipeline_mode<synchronous>, transform_indices = @transform_6, window_bounds = array<i64: 1, 128>}, {transform_indices = @transform_7, window_bounds = array<i64: 8, 128>}]} {
    %c0 = arith.constant 0 : index
    %c0_0 = arith.constant 0 : index
    %0 = vector.load %arg1[%c0, %c0_0] : memref<8x32xbf16, #tpu.memory_space<vmem>>, vector<8x32xbf16>
    %c0_1 = arith.constant 0 : index
    %c0_2 = arith.constant 0 : index
    %1 = vector.load %arg2[%c0_1, %c0_2] : memref<32x512xbf16, #tpu.memory_space<vmem>>, vector<32x512xbf16>
    %cst = arith.constant dense<0.000000e+00> : vector<8x512xf32>
    %2 = tpu.matmul %0, %1, %cst {dimension_numbers = #tpu.dot_dimension_numbers<[1], [0], [0], [1], [0, 0, 1, 1], [], []>} : vector<8x32xbf16>, vector<32x512xbf16>, vector<8x512xf32> -> vector<8x512xf32>
    %c0_3 = arith.constant 0 : index
    %c0_4 = arith.constant 0 : index
    %3 = vector.load %arg3[%c0_3, %c0_4] : memref<1x512xf32, #tpu.memory_space<vmem>>, vector<1x512xf32>
    %4 = vector.broadcast %3 : vector<1x512xf32> to vector<8x512xf32>
    %5 = arith.addf %2, %4 : vector<8x512xf32>
    %cst_5 = arith.constant 0.000000e+00 : f32
    %6 = vector.broadcast %cst_5 : f32 to vector<8x512xf32>
    %7 = arith.maximumf %5, %6 : vector<8x512xf32>
    %8 = arith.truncf %7 : vector<8x512xf32> to vector<8x512xbf16>
    %c0_6 = arith.constant 0 : index
    %c0_7 = arith.constant 0 : index
    %9 = vector.load %arg4[%c0_6, %c0_7] : memref<512x256xbf16, #tpu.memory_space<vmem>>, vector<512x256xbf16>
    %cst_8 = arith.constant dense<0.000000e+00> : vector<8x256xf32>
    %10 = tpu.matmul %8, %9, %cst_8 {dimension_numbers = #tpu.dot_dimension_numbers<[1], [0], [0], [1], [0, 0, 1, 1], [], []>} : vector<8x512xbf16>, vector<512x256xbf16>, vector<8x256xf32> -> vector<8x256xf32>
    %c0_9 = arith.constant 0 : index
    %c0_10 = arith.constant 0 : index
    %11 = vector.load %arg5[%c0_9, %c0_10] : memref<1x256xf32, #tpu.memory_space<vmem>>, vector<1x256xf32>
    %12 = vector.broadcast %11 : vector<1x256xf32> to vector<8x256xf32>
    %13 = arith.addf %10, %12 : vector<8x256xf32>
    %cst_11 = arith.constant 0.000000e+00 : f32
    %14 = vector.broadcast %cst_11 : f32 to vector<8x256xf32>
    %15 = arith.maximumf %13, %14 : vector<8x256xf32>
    %16 = arith.truncf %15 : vector<8x256xf32> to vector<8x256xbf16>
    %c0_12 = arith.constant 0 : index
    %c0_13 = arith.constant 0 : index
    %17 = vector.load %arg6[%c0_12, %c0_13] : memref<256x128xbf16, #tpu.memory_space<vmem>>, vector<256x128xbf16>
    %cst_14 = arith.constant dense<0.000000e+00> : vector<8x128xf32>
    %18 = tpu.matmul %16, %17, %cst_14 {dimension_numbers = #tpu.dot_dimension_numbers<[1], [0], [0], [1], [0, 0, 1, 1], [], []>} : vector<8x256xbf16>, vector<256x128xbf16>, vector<8x128xf32> -> vector<8x128xf32>
    %c0_15 = arith.constant 0 : index
    %c0_16 = arith.constant 0 : index
    %19 = vector.load %arg7[%c0_15, %c0_16] : memref<1x128xf32, #tpu.memory_space<vmem>>, vector<1x128xf32>
    %20 = vector.broadcast %19 : vector<1x128xf32> to vector<8x128xf32>
    %21 = arith.addf %18, %20 : vector<8x128xf32>
    %22 = tpu.iota {dimensions = array<i32: 1>} : vector<8x128xi32>
    %c2_i32 = arith.constant 2 : i32
    %23 = vector.broadcast %c2_i32 : i32 to vector<8x128xi32>
    %24 = arith.cmpi slt, %22, %23 : vector<8x128xi32>
    %cst_17 = arith.constant 0xFF800000 : f32
    %25 = vector.broadcast %cst_17 : f32 to vector<8x128xf32>
    %26 = arith.select %24, %21, %25 : vector<8x128xi1>, vector<8x128xf32>
    %cst_18 = arith.constant dense<0xFF800000> : vector<8xf32>
    %27 = vector.multi_reduction <maximumf>, %26, %cst_18 [1] : vector<8x128xf32> to vector<8xf32>
    %28 = vector.shape_cast %27 : vector<8xf32> to vector<8x1xf32>
    %29 = vector.broadcast %28 : vector<8x1xf32> to vector<8x128xf32>
    %30 = arith.subf %26, %29 : vector<8x128xf32>
    %31 = math.exp %30 : vector<8x128xf32>
    %cst_19 = arith.constant dense<0.000000e+00> : vector<8xf32>
    %32 = vector.multi_reduction <add>, %31, %cst_19 [1] : vector<8x128xf32> to vector<8xf32>
    %33 = vector.shape_cast %32 : vector<8xf32> to vector<8x1xf32>
    %34 = math.log %33 : vector<8x1xf32>
    %35 = vector.broadcast %34 : vector<8x1xf32> to vector<8x128xf32>
    %36 = arith.subf %30, %35 : vector<8x128xf32>
    %c0_20 = arith.constant 0 : index
    %c0_21 = arith.constant 0 : index
    %37 = vector.load %arg8[%c0_20, %c0_21] : memref<8x128xf32, #tpu.memory_space<vmem>>, vector<8x128xf32>
    tpu.vector_store %arg8[%c0_20, %c0_21], %36 {strides = array<i32>} : memref<8x128xf32, #tpu.memory_space<vmem>>, vector<8x128xf32>,
    return
  }
  func.func @transform_0(%arg0: i32) -> (i32, i32) {
    %c0_i32 = arith.constant 0 : i32
    %c0_i32_0 = arith.constant 0 : i32
    return %arg0, %c0_i32 : i32, i32
  }
  func.func @transform_1(%arg0: i32) -> (i32, i32) {
    %c0_i32 = arith.constant 0 : i32
    %c0_i32_0 = arith.constant 0 : i32
    %c0_i32_1 = arith.constant 0 : i32
    return %c0_i32, %c0_i32_0 : i32, i32
  }
  func.func @transform_2(%arg0: i32) -> (i32, i32) {
    %c0_i32 = arith.constant 0 : i32
    %c0_i32_0 = arith.constant 0 : i32
    %c0_i32_1 = arith.constant 0 : i32
    return %c0_i32, %c0_i32_0 : i32, i32
  }
  func.func @transform_3(%arg0: i32) -> (i32, i32) {
    %c0_i32 = arith.constant 0 : i32
    %c0_i32_0 = arith.constant 0 : i32
    %c0_i32_1 = arith.constant 0 : i32
    return %c0_i32, %c0_i32_0 : i32, i32
  }
  func.func @transform_4(%arg0: i32) -> (i32, i32) {
    %c0_i32 = arith.constant 0 : i32
    %c0_i32_0 = arith.constant 0 : i32
    %c0_i32_1 = arith.constant 0 : i32
    return %c0_i32, %c0_i32_0 : i32, i32
  }
  func.func @transform_5(%arg0: i32) -> (i32, i32) {
    %c0_i32 = arith.constant 0 : i32
    %c0_i32_0 = arith.constant 0 : i32
    %c0_i32_1 = arith.constant 0 : i32
    return %c0_i32, %c0_i32_0 : i32, i32
  }
  func.func @transform_6(%arg0: i32) -> (i32, i32) {
    %c0_i32 = arith.constant 0 : i32
    %c0_i32_0 = arith.constant 0 : i32
    %c0_i32_1 = arith.constant 0 : i32
    return %c0_i32, %c0_i32_0 : i32, i32
  }
  func.func @transform_7(%arg0: i32) -> (i32, i32) {
    %c0_i32 = arith.constant 0 : i32
    %c0_i32_0 = arith.constant 0 : i32
    return %arg0, %c0_i32 : i32, i32
  }
}

</mosaic_0001>

<bundles_post_ra>
// kernel: tpu_custom_call.1
= control target key start
LH: loop header
LB: loop body
LE: loop exit
PB: predicated region body
PF: predicated region fallthrough
CT: control target
= control target key end

     0   :  { %12 = vsyncpa [#allocation3], 0  ;;  %s1614_s0 = inlined_call_operand.hbm [shape: bf16[8,32], index: 0, kind: input, shape index: {}]   ;;  %s1615_s1 = inlined_call_operand.hbm [shape: bf16[32,512], index: 1, kind: input, shape index: {}]   ;;  %s1616_s2 = inlined_call_operand.hbm [shape: f32[1,512], index: 2, kind: input, shape index: {}]   ;;  %s1617_s3 = inlined_call_operand.hbm [shape: bf16[512,256], index: 3, kind: input, shape index: {}]   ;;  %s1618_s4 = inlined_call_operand.vmem [shape: f32[1,256], index: 4, kind: input, shape index: {}]   ;;  %s1619_s5 = inlined_call_operand.hbm [shape: bf16[256,128], index: 5, kind: input, shape index: {}]   ;;  %s1620_s6 = inlined_call_operand.vmem [shape: f32[1,128], index: 6, kind: input, shape index: {}]   ;;  %s1621_s7 = inlined_call_operand.hbm [shape: f32[8,128], index: 7, kind: output, shape index: {}]  }
   0x1   :  { %13 = vsyncpa [#allocation6], 0 }
   0x2   :  { %14 = vsyncpa [#allocation9], 0  ;;  %s31_s26 = sshll.u32 %s1615_s1, 4  ;;  %s32_s26 = int_to_ptr.hbm [resolvable:$true] %s31_s26 }
   0x3   :  { %15 = vsyncpa [#allocation4], 0  ;;  %s1528_s27 = smov [#allocation5]   ;;  %s55_s8 = sshll.u32 %s1617_s3, 4  ;;  %s56_s8 = int_to_ptr.hbm [resolvable:$true] %s55_s8 }
   0x4   :  { %s33_s28 = sshll.u32 %s1528_s27, 4  ;;  %s1529_s9 = smov 256   ;;  %s34_s28 = int_to_ptr.vmem [resolvable:$true] %s33_s28 }
   0x5   :  { %s1530_s10 = smov 16   ;;  %s1531_s11 = smov [#allocation8]  }
   0x6   :  { %39 = dma.hbm_to_vmem [thread:$0]  %s32_s26, 1024, %s34_s28, [#allocation6], %s1529_s9, %s1529_s9, %s1530_s10  }
   0x7   :  { %s57_s12 = sshll.u32 %s1531_s11, 4  ;;  %s1532_s13 = smov 128   ;;  %s58_s12 = int_to_ptr.vmem [resolvable:$true] %s57_s12 }
   0x8   :  { %s1533_s14 = smov 8   ;;  %s21_s16 = sshll.u32 %s1614_s0, 4  ;;  %s22_s16 = int_to_ptr.hbm [resolvable:$true] %s21_s16 }
   0x9   :  { %63 = dma.hbm_to_vmem [thread:$0]  %s56_s8, 8192, %s58_s12, [#allocation9], %s1532_s13, %s1532_s13, %s1533_s14  }
   0xa   :  { %s1534_s17 = smov [#allocation2]   ;;  %s45_s20 = sshll.u32 %s1616_s2, 4  ;;  %s46_s20 = int_to_ptr.hbm [resolvable:$true] %s45_s20 }
   0xb   :  { %s23_s18 = sshll.u32 %s1534_s17, 4  ;;  %s1535_s21 = smov [#allocation7]   ;;  %s24_s18 = int_to_ptr.vmem [resolvable:$true] %s23_s18 }
   0xc   :  { %26 = dma.hbm_to_vmem [thread:$0]  %s22_s16, 64, %s24_s18, [#allocation3]  }
   0xd   :  { %s47_s22 = sshll.u32 %s1535_s21, 4  ;;  %s70_s25 = sshll.u32 %s1619_s5, 4  ;;  %s48_s22 = int_to_ptr.vmem [resolvable:$true] %s47_s22  ;;  %s71_s25 = int_to_ptr.hbm [resolvable:$true] %s70_s25 }
   0xe   :  { %50 = dma.hbm_to_vmem [thread:$0]  %s46_s20, 64, %s48_s22, [#allocation6]  }
   0xf   :  { %s1536_s0 = smov [#allocation10]   ;;  %s1537_s27 = smov 64  }
  0x10   :  { %s72_s26 = sshll.u32 %s1536_s0, 4  ;;  %s1538_s28 = smov 4   ;;  %s73_s26 = int_to_ptr.vmem [resolvable:$true] %s72_s26 }
  0x11   :  { %78 = dma.hbm_to_vmem [thread:$0]  %s71_s25, 2048, %s73_s26, [#allocation9], %s1537_s27, %s1537_s27, %s1538_s28  }
  0x12   :  { %1520 = dma.done.wait [#allocation3], 64  }
  0x13   :  { %1521 = vsyncadd [#allocation3], 4294967232 }
  0x14   :  { %1522 = dma.done.wait [#allocation6], 1088  }
  0x15   :  { %1523 = vsyncadd [#allocation6], 4294966208 }
  0x16   :  { %1524 = dma.done.wait [#allocation9], 10240  }
  0x17   :  { %1525 = vsyncadd [#allocation9], 4294957056  ;;  %v933_v0 = vld [vmem:[#allocation5 + $0x20] sm:$0xf]  ;;  %v1277_v1 = vld [vmem:[#allocation5 + $0x2c] sm:$0xf0] }
  0x18   :  { %v1275_v2 = vld [vmem:[#allocation5 + $0x24] sm:$0xf]  ;;  %v934_v3 = vor.u32 %v1277_v1, %v933_v0  ;;  %v935_v4 = vld [vmem:[#allocation5 + $0x30] sm:$0xf0]  ;;  %v917_v5 = vld [vmem:[#allocation5] sm:$0xf] }
  0x19   :  { %v1273_v6 = vld [vmem:[#allocation5 + $0xc] sm:$0xf0]  ;;  %v938_v7 = vor.u32 %v1275_v2, %v935_v4  ;;  %v1271_v8 = vld [vmem:[#allocation5 + $0x4] sm:$0xf]  ;;  %v919_v9 = vld [vmem:[#allocation5 + $0x10] sm:$0xf0] }
  0x1a   :  { %vm161_vm0 = vcmask 261120   ;;  %171 = vmatpush.bf16.msra.mxu2 %v934_v3  ;;  %v918_v10 = vor.u32 %v1273_v6, %v917_v5  ;;  %v941_v11 = vld [vmem:[#allocation5 + $0x28] sm:$0xf]  ;;  %v1278_v12 = vld [vmem:[#allocation5 + $0x34] sm:$0xf0]  ;;  %v922_v14 = vor.u32 %v1271_v8, %v919_v9  ;;  %s1539_s30 = smov [#allocation11]  }
  0x1b   :  { %v1276_v13 = vld [vmem:[#allocation5 + $0x2c] sm:$0xf]  ;;  %184 = vmatpush.bf16.msra.mxu3 %v938_v7  ;;  %v942_v15 = vor.u32 %v1278_v12, %v941_v11  ;;  %v943_v16 = vld [vmem:[#allocation5 + $0x38] sm:$0xf0]  ;;  %v925_v17 = vld [vmem:[#allocation5 + $0x8] sm:$0xf] }
  0x1c   :  { %v1274_v18 = vld [vmem:[#allocation5 + $0x14] sm:$0xf0]  ;;  %v1595_v19 = vld [vmem:[#allocation2] sm:$0xf]  ;;  %v946_v20 = vor.u32 %v1276_v13, %v943_v16  ;;  %v1272_v21 = vld [vmem:[#allocation5 + $0xc] sm:$0xf] }
  0x1d   :  { %v927_v22 = vld [vmem:[#allocation5 + $0x18] sm:$0xf0]  ;;  %v1009_v23 = vld [vmem:[#allocation8 + $0x70] sm:$0xf]  ;;  %v1001_v29 = vld [vmem:[#allocation8 + $0x60] sm:$0xf]  ;;  %v926_v32 = vor.u32 %v1274_v18, %v925_v17 }
  0x1e   :  { %v1294_v24 = vld [vmem:[#allocation8 + $0x74] sm:$0xf0]  ;;  %v1073_v25 = vld [vmem:[#allocation8 + $0xf0] sm:$0xf]  ;;  %172 = vmatpush.bf16.msra.mxu2 %v918_v10  ;;  %v1292_v30 = vld [vmem:[#allocation8 + $0x64] sm:$0xf0]  ;;  %v930_v34 = vor.u32 %v1272_v21, %v927_v22 }
  0x1f   :  { %v1310_v26 = vld [vmem:[#allocation8 + $0xf4] sm:$0xf0]  ;;  %v1010_v27 = vor.u32 %v1294_v24, %v1009_v23  ;;  %v1065_v31 = vld [vmem:[#allocation8 + $0xe0] sm:$0xf]  ;;  %185 = vmatpush.bf16.msra.mxu3 %v922_v14  ;;  %v1308_v33 = vld [vmem:[#allocation8 + $0xe4] sm:$0xf0]  ;;  %v1002_v35 = vor.u32 %v1292_v30, %v1001_v29 }
  0x20   :  { %v1074_v28 = vor.u32 %v1310_v26, %v1073_v25  ;;  %v1066_v36 = vor.u32 %v1308_v33, %v1065_v31  ;;  %v993_v37 = vld [vmem:[#allocation8 + $0x50] sm:$0xf]  ;;  %v1290_v38 = vld [vmem:[#allocation8 + $0x54] sm:$0xf0]  ;;  %v985_v44 = vld [vmem:[#allocation8 + $0x40] sm:$0xf] }
  0x21   :  { %615 = vmatpush.bf16.msra.mxu0 %v1010_v27  ;;  %947 = vmatmul.msk.bf16.vlgmr.msra.gmra.mxu2 %vm161_vm0, %v1595_v19  ;;  %v1057_v39 = vld [vmem:[#allocation8 + $0xd0] sm:$0xf]  ;;  %v1306_v40 = vld [vmem:[#allocation8 + $0xd4] sm:$0xf0]  ;;  %v994_v43 = vor.u32 %v1290_v38, %v993_v37  ;;  %v1288_v49 = vld [vmem:[#allocation8 + $0x44] sm:$0xf0] }
  0x22   :  { %197 = vmatpush.bf16.msrb.mxu2 %v942_v15  ;;  %628 = vmatpush.bf16.msra.mxu1 %v1074_v28  ;;  %v1137_v41 = vld [vmem:[#allocation8 + $0x170] sm:$0xf]  ;;  %v1326_v42 = vld [vmem:[#allocation8 + $0x174] sm:$0xf0]  ;;  %v1058_v48 = vor.u32 %v1306_v40, %v1057_v39  ;;  %v1049_v50 = vld [vmem:[#allocation8 + $0xc0] sm:$0xf]  ;;  %v986_v58 = vor.u32 %v1288_v49, %v985_v44 }
  0x23   :  { %210 = vmatpush.bf16.msrb.mxu3 %v946_v20  ;;  %v1138_v45 = vor.u32 %v1326_v42, %v1137_v41  ;;  %v1201_v46 = vld [vmem:[#allocation8 + $0x1f0] sm:$0xf]  ;;  %v1342_v47 = vld [vmem:[#allocation8 + $0x1f4] sm:$0xf0]  ;;  %v1304_v51 = vld [vmem:[#allocation8 + $0xc4] sm:$0xf0] }
  0x24   :  { %948 = vmatmul.msk.bf16.vlgmr.msra.gmra.mxu3 %vm161_vm0, %v1595_v19  ;;  %v1202_v52 = vor.u32 %v1342_v47, %v1201_v46  ;;  %v1129_v53 = vld [vmem:[#allocation8 + $0x160] sm:$0xf]  ;;  %v1324_v54 = vld [vmem:[#allocation8 + $0x164] sm:$0xf0]  ;;  %v977_v59 = vld [vmem:[#allocation8 + $0x30] sm:$0xf]  ;;  %v1050_v63 = vor.u32 %v1304_v51, %v1049_v50 }
  0x25   :  { %616 = vmatpush.bf16.msra.mxu0 %v1002_v35  ;;  %v1193_v55 = vld [vmem:[#allocation8 + $0x1e0] sm:$0xf]  ;;  %v1130_v56 = vor.u32 %v1324_v54, %v1129_v53  ;;  %v1340_v57 = vld [vmem:[#allocation8 + $0x1e4] sm:$0xf0]  ;;  %v1286_v60 = vld [vmem:[#allocation8 + $0x34] sm:$0xf0] }
  0x26   :  { %198 = vmatpush.bf16.msrb.mxu2 %v926_v32  ;;  %629 = vmatpush.bf16.msra.mxu1 %v1066_v36  ;;  %v1194_v61 = vor.u32 %v1340_v57, %v1193_v55  ;;  %v1121_v62 = vld [vmem:[#allocation8 + $0x150] sm:$0xf]  ;;  %v1322_v0 = vld [vmem:[#allocation8 + $0x154] sm:$0xf0]  ;;  %v1113_v7 = vld [vmem:[#allocation8 + $0x140] sm:$0xf]  ;;  %v978_v9 = vor.u32 %v1286_v60, %v977_v59 }
  0x27   :  { %211 = vmatpush.bf16.msrb.mxu3 %v930_v34  ;;  %v1185_v1 = vld [vmem:[#allocation8 + $0x1d0] sm:$0xf]  ;;  %v1338_v2 = vld [vmem:[#allocation8 + $0x1d4] sm:$0xf0]  ;;  %v1122_v5 = vor.u32 %v1322_v0, %v1121_v62  ;;  %v1320_v8 = vld [vmem:[#allocation8 + $0x144] sm:$0xf0] }
  0x28   :  { %v1041_v3 = vld [vmem:[#allocation8 + $0xb0] sm:$0xf]  ;;  %v1302_v4 = vld [vmem:[#allocation8 + $0xb4] sm:$0xf0]  ;;  %v1186_v6 = vor.u32 %v1338_v2, %v1185_v1  ;;  %v1177_v10 = vld [vmem:[#allocation8 + $0x1c0] sm:$0xf]  ;;  %v1114_v17 = vor.u32 %v1320_v8, %v1113_v7 }
  0x29   :  { %617 = vmatpush.bf16.msra.mxu0 %v994_v43  ;;  %v1336_v11 = vld [vmem:[#allocation8 + $0x1c4] sm:$0xf0]  ;;  %v1042_v12 = vor.u32 %v1302_v4, %v1041_v3  ;;  %v969_v13 = vld [vmem:[#allocation8 + $0x20] sm:$0xf]  ;;  %v1105_v20 = vld [vmem:[#allocation8 + $0x130] sm:$0xf] }
  0x2a   :  { %641 = vmatpush.bf16.msra.mxu2 %v1138_v45  ;;  %630 = vmatpush.bf16.msra.mxu1 %v1058_v48  ;;  %v1284_v14 = vld [vmem:[#allocation8 + $0x24] sm:$0xf0]  ;;  %v1033_v15 = vld [vmem:[#allocation8 + $0xa0] sm:$0xf]  ;;  %v1178_v18 = vor.u32 %v1336_v11, %v1177_v10  ;;  %v1318_v21 = vld [vmem:[#allocation8 + $0x134] sm:$0xf0] }
  0x2b   :  { %654 = vmatpush.bf16.msra.mxu3 %v1202_v52  ;;  %v1300_v16 = vld [vmem:[#allocation8 + $0xa4] sm:$0xf0]  ;;  %v970_v22 = vor.u32 %v1284_v14, %v969_v13  ;;  %v1169_v23 = vld [vmem:[#allocation8 + $0x1b0] sm:$0xf]  ;;  %v1334_v24 = vld [vmem:[#allocation8 + $0x1b4] sm:$0xf0]  ;;  %v1106_v30 = vor.u32 %v1318_v21, %v1105_v20 }
  0x2c   :  { %v1034_v25 = vor.u32 %v1300_v16, %v1033_v15  ;;  %v961_v26 = vld [vmem:[#allocation8 + $0x10] sm:$0xf]  ;;  %v1282_v27 = vld [vmem:[#allocation8 + $0x14] sm:$0xf0]  ;;  %v1170_v31 = vor.u32 %v1334_v24, %v1169_v23  ;;  %v1097_v32 = vld [vmem:[#allocation8 + $0x120] sm:$0xf] }
  0x2d   :  { %618 = vmatpush.bf16.msra.mxu0 %v986_v58  ;;  %v1025_v28 = vld [vmem:[#allocation8 + $0x90] sm:$0xf]  ;;  %v1298_v29 = vld [vmem:[#allocation8 + $0x94] sm:$0xf0]  ;;  %v1316_v33 = vld [vmem:[#allocation8 + $0x124] sm:$0xf0]  ;;  %v962_v34 = vor.u32 %v1282_v27, %v961_v26 }
  0x2e   :  { %642 = vmatpush.bf16.msra.mxu2 %v1130_v56  ;;  %631 = vmatpush.bf16.msra.mxu1 %v1050_v63  ;;  %v1161_v35 = vld [vmem:[#allocation8 + $0x1a0] sm:$0xf]  ;;  %v1332_v36 = vld [vmem:[#allocation8 + $0x1a4] sm:$0xf0]  ;;  %v1026_v37 = vor.u32 %v1298_v29, %v1025_v28  ;;  %v1293_v42 = vld [vmem:[#allocation8 + $0x74] sm:$0xf]  ;;  %v1098_v43 = vor.u32 %v1316_v33, %v1097_v32 }
  0x2f   :  { %655 = vmatpush.bf16.msra.mxu3 %v1194_v61  ;;  %v953_v38 = vld [vmem:[#allocation8] sm:$0xf]  ;;  %v1280_v39 = vld [vmem:[#allocation8 + $0x4] sm:$0xf0]  ;;  %v1309_v44 = vld [vmem:[#allocation8 + $0xf4] sm:$0xf]  ;;  %v1162_v46 = vor.u32 %v1332_v36, %v1161_v35 }
  0x30   :  { %v1017_v40 = vld [vmem:[#allocation8 + $0x80] sm:$0xf]  ;;  %v1296_v41 = vld [vmem:[#allocation8 + $0x84] sm:$0xf0]  ;;  %v1075_v45 = vld [vmem:[#allocation8 + $0xf8] sm:$0xf0]  ;;  %v954_v47 = vor.u32 %v1280_v39, %v953_v38 }
  0x31   :  { %619 = vmatpush.bf16.msra.mxu0 %v978_v9  ;;  %949 = vmatmul.msk.bf16.vlgmr.msrb.gmra.mxu2 %vm161_vm0, %v1595_v19  ;;  %v1018_v48 = vor.u32 %v1296_v41, %v1017_v40  ;;  %v1078_v50 = vor.u32 %v1309_v44, %v1075_v45  ;;  %v1291_v51 = vld [vmem:[#allocation8 + $0x64] sm:$0xf]  ;;  %v1003_v52 = vld [vmem:[#allocation8 + $0x68] sm:$0xf0]  ;;  %v1289_v57 = vld [vmem:[#allocation8 + $0x54] sm:$0xf] }
  0x32   :  { %643 = vmatpush.bf16.msra.mxu2 %v1122_v5  ;;  %632 = vmatpush.bf16.msra.mxu1 %v1042_v12  ;;  %v1307_v53 = vld [vmem:[#allocation8 + $0xe4] sm:$0xf]  ;;  %v1067_v54 = vld [vmem:[#allocation8 + $0xe8] sm:$0xf0]  ;;  %v1006_v55 = vor.u32 %v1291_v51, %v1003_v52  ;;  %v995_v58 = vld [vmem:[#allocation8 + $0x58] sm:$0xf0] }
  0x33   :  { %656 = vmatpush.bf16.msra.mxu3 %v1186_v6  ;;  %v1070_v56 = vor.u32 %v1307_v53, %v1067_v54  ;;  %v1305_v59 = vld [vmem:[#allocation8 + $0xd4] sm:$0xf]  ;;  %v998_v60 = vor.u32 %v1289_v57, %v995_v58  ;;  %v1059_v61 = vld [vmem:[#allocation8 + $0xd8] sm:$0xf0]  ;;  %v1089_v63 = vld [vmem:[#allocation8 + $0x110] sm:$0xf] }
  0x34   :  { %950 = vmatmul.msk.bf16.vlgmr.msrb.gmra.mxu3 %vm161_vm0, %v1595_v19  ;;  %v1011_v19 = vld [vmem:[#allocation8 + $0x78] sm:$0xf0]  ;;  %v1062_v62 = vor.u32 %v1305_v59, %v1059_v61  ;;  %v1314_v0 = vld [vmem:[#allocation8 + $0x114] sm:$0xf0]  ;;  %v1153_v1 = vld [vmem:[#allocation8 + $0x190] sm:$0xf] }
  0x35   :  { %620 = vmatpush.bf16.msra.mxu0 %v970_v22  ;;  %v1014_v49 = vor.u32 %v1293_v42, %v1011_v19  ;;  %v1090_v2 = vor.u32 %v1314_v0, %v1089_v63  ;;  %v1330_v3 = vld [vmem:[#allocation8 + $0x194] sm:$0xf0]  ;;  %v1287_v4 = vld [vmem:[#allocation8 + $0x44] sm:$0xf]  ;;  %v987_v5 = vld [vmem:[#allocation8 + $0x48] sm:$0xf0] }
  0x36   :  { %644 = vmatpush.bf16.msra.mxu2 %v1114_v17  ;;  %633 = vmatpush.bf16.msra.mxu1 %v1034_v25  ;;  %v1154_v6 = vor.u32 %v1330_v3, %v1153_v1  ;;  %v990_v7 = vor.u32 %v1287_v4, %v987_v5  ;;  %v1303_v8 = vld [vmem:[#allocation8 + $0xc4] sm:$0xf]  ;;  %v1051_v9 = vld [vmem:[#allocation8 + $0xc8] sm:$0xf0]  ;;  %v1081_v11 = vld [vmem:[#allocation8 + $0x100] sm:$0xf] }
  0x37   :  { %657 = vmatpush.bf16.msra.mxu3 %v1178_v18  ;;  %v1054_v10 = vor.u32 %v1303_v8, %v1051_v9  ;;  %v1312_v12 = vld [vmem:[#allocation8 + $0x104] sm:$0xf0]  ;;  %v1145_v13 = vld [vmem:[#allocation8 + $0x180] sm:$0xf]  ;;  %v1285_v16 = vld [vmem:[#allocation8 + $0x34] sm:$0xf] }
  0x38   :  { %v1082_v14 = vor.u32 %v1312_v12, %v1081_v11  ;;  %v1328_v15 = vld [vmem:[#allocation8 + $0x184] sm:$0xf0]  ;;  %v979_v17 = vld [vmem:[#allocation8 + $0x38] sm:$0xf0]  ;;  %v1301_v21 = vld [vmem:[#allocation8 + $0xb4] sm:$0xf] }
  0x39   :  { %621 = vmatpush.bf16.msra.mxu0 %v962_v34  ;;  %v1146_v18 = vor.u32 %v1328_v15, %v1145_v13  ;;  %v982_v20 = vor.u32 %v1285_v16, %v979_v17  ;;  %v1043_v22 = vld [vmem:[#allocation8 + $0xb8] sm:$0xf0]  ;;  %v1325_v23 = vld [vmem:[#allocation8 + $0x174] sm:$0xf]  ;;  %v1299_v32 = vld [vmem:[#allocation8 + $0xa4] sm:$0xf] }
  0x3a   :  { %645 = vmatpush.bf16.msra.mxu2 %v1106_v30  ;;  %634 = vmatpush.bf16.msra.mxu1 %v1026_v37  ;;  %v1046_v24 = vor.u32 %v1301_v21, %v1043_v22  ;;  %v1139_v25 = vld [vmem:[#allocation8 + $0x178] sm:$0xf0]  ;;  %v1341_v26 = vld [vmem:[#allocation8 + $0x1f4] sm:$0xf]  ;;  %v1283_v30 = vld [vmem:[#allocation8 + $0x24] sm:$0xf] }
  0x3b   :  { %658 = vmatpush.bf16.msra.mxu3 %v1170_v31  ;;  %v1203_v27 = vld [vmem:[#allocation8 + $0x1f8] sm:$0xf0]  ;;  %v1142_v28 = vor.u32 %v1325_v23, %v1139_v25  ;;  %v971_v31 = vld [vmem:[#allocation8 + $0x28] sm:$0xf0]  ;;  %v1323_v35 = vld [vmem:[#allocation8 + $0x164] sm:$0xf] }
  0x3c   :  { %v1206_v29 = vor.u32 %v1341_v26, %v1203_v27  ;;  %v974_v33 = vor.u32 %v1283_v30, %v971_v31  ;;  %v1035_v34 = vld [vmem:[#allocation8 + $0xa8] sm:$0xf0]  ;;  %v1339_v39 = vld [vmem:[#allocation8 + $0x1e4] sm:$0xf]  ;;  %v1281_v42 = vld [vmem:[#allocation8 + $0x14] sm:$0xf] }
  0x3d   :  { %622 = vmatpush.bf16.msra.mxu0 %v954_v47  ;;  %v1131_v36 = vld [vmem:[#allocation8 + $0x168] sm:$0xf0]  ;;  %v1038_v37 = vor.u32 %v1299_v32, %v1035_v34  ;;  %v963_v19 = vld [vmem:[#allocation8 + $0x18] sm:$0xf0]  ;;  %v1279_v53 = vld [vmem:[#allocation8 + $0x4] sm:$0xf] }
  0x3e   :  { %646 = vmatpush.bf16.msra.mxu2 %v1098_v43  ;;  %635 = vmatpush.bf16.msra.mxu1 %v1018_v48  ;;  %v1134_v38 = vor.u32 %v1323_v35, %v1131_v36  ;;  %v1195_v40 = vld [vmem:[#allocation8 + $0x1e8] sm:$0xf0]  ;;  %v1297_v43 = vld [vmem:[#allocation8 + $0x94] sm:$0xf]  ;;  %v966_v44 = vor.u32 %v1281_v42, %v963_v19  ;;  %v1027_v45 = vld [vmem:[#allocation8 + $0x98] sm:$0xf0] }
  0x3f   :  { %659 = vmatpush.bf16.msra.mxu3 %v1162_v46  ;;  %v1198_v41 = vor.u32 %v1339_v39, %v1195_v40  ;;  %v1321_v46 = vld [vmem:[#allocation8 + $0x154] sm:$0xf]  ;;  %v1123_v47 = vld [vmem:[#allocation8 + $0x158] sm:$0xf0]  ;;  %v1030_v48 = vor.u32 %v1297_v43, %v1027_v45  ;;  %v955_v54 = vld [vmem:[#allocation8 + $0x8] sm:$0xf0] }
  0x40   :  { %v1187_v51 = vld [vmem:[#allocation8 + $0x1d8] sm:$0xf0]  ;;  %v1019_v57 = vld [vmem:[#allocation8 + $0x88] sm:$0xf0]  ;;  %v1319_v58 = vld [vmem:[#allocation8 + $0x144] sm:$0xf] }
  0x41   :  { %667 = vmatpush.bf16.msrb.mxu0 %v1014_v49  ;;  %v1126_v49 = vor.u32 %v1321_v46, %v1123_v47  ;;  %v1115_v59 = vld [vmem:[#allocation8 + $0x148] sm:$0xf0]  ;;  %v1317_v1 = vld [vmem:[#allocation8 + $0x134] sm:$0xf]  ;;  %v1171_v5 = vld [vmem:[#allocation8 + $0x1b8] sm:$0xf0] }
  0x42   :  { %680 = vmatpush.bf16.msrb.mxu1 %v1078_v50  ;;  %647 = vmatpush.bf16.msra.mxu2 %v1090_v2  ;;  %v1337_v50 = vld [vmem:[#allocation8 + $0x1d4] sm:$0xf]  ;;  %v1118_v61 = vor.u32 %v1319_v58, %v1115_v59  ;;  %v1179_v63 = vld [vmem:[#allocation8 + $0x1c8] sm:$0xf0]  ;;  %v1107_v2 = vld [vmem:[#allocation8 + $0x138] sm:$0xf0] }
  0x43   :  { %660 = vmatpush.bf16.msra.mxu3 %v1154_v6  ;;  %v1190_v52 = vor.u32 %v1337_v50, %v1187_v51  ;;  %v1333_v3 = vld [vmem:[#allocation8 + $0x1b4] sm:$0xf]  ;;  %v1110_v4 = vor.u32 %v1317_v1, %v1107_v2  ;;  %v1099_v8 = vld [vmem:[#allocation8 + $0x128] sm:$0xf0]  ;;  %v1331_v9 = vld [vmem:[#allocation8 + $0x1a4] sm:$0xf] }
  0x44   :  { %v1174_v6 = vor.u32 %v1333_v3, %v1171_v5  ;;  %v1163_v11 = vld [vmem:[#allocation8 + $0x1a8] sm:$0xf0]  ;;  %v1091_v15 = vld [vmem:[#allocation8 + $0x118] sm:$0xf0]  ;;  %v1329_v16 = vld [vmem:[#allocation8 + $0x194] sm:$0xf] }
  0x45   :  { %668 = vmatpush.bf16.msrb.mxu0 %v1006_v55  ;;  %v1295_v55 = vld [vmem:[#allocation8 + $0x84] sm:$0xf]  ;;  %v1166_v13 = vor.u32 %v1331_v9, %v1163_v11  ;;  %v1155_v17 = vld [vmem:[#allocation8 + $0x198] sm:$0xf0]  ;;  %v1083_v25 = vld [vmem:[#allocation8 + $0x108] sm:$0xf0] }
  0x46   :  { %681 = vmatpush.bf16.msrb.mxu1 %v1070_v56  ;;  %648 = vmatpush.bf16.msra.mxu2 %v1082_v14  ;;  %v958_v56 = vor.u32 %v1279_v53, %v955_v54  ;;  %v1313_v14 = vld [vmem:[#allocation8 + $0x114] sm:$0xf]  ;;  %v1158_v22 = vor.u32 %v1329_v16, %v1155_v17  ;;  %v1350_v50 = vld [vmem:[#allocation10 + $0x38] sm:$0xff]  ;;  %v1347_v53 = vld [vmem:[#allocation10 + $0x20] sm:$0xff]  ;;  %s901_s8 = sshll.u32 %s1539_s30, 4  ;;  %s903_s10 = sshll.u32 %s1621_s7, 4  ;;  %s902_s8 = int_to_ptr.vmem [resolvable:$true] %s901_s8  ;;  %s904_s10 = int_to_ptr.hbm [resolvable:$true] %s903_s10 }
  0x47   :  { %661 = vmatpush.bf16.msra.mxu3 %v1146_v18  ;;  %v1094_v21 = vor.u32 %v1313_v14, %v1091_v15  ;;  %v1349_v51 = vld [vmem:[#allocation10 + $0x30] sm:$0xff]  ;;  %v1346_v54 = vld [vmem:[#allocation10 + $0x18] sm:$0xff]  ;;  %v1344_v58 = vld [vmem:[#allocation10 + $0x8] sm:$0xff] }
  0x48   :  { %v1356_v59 = vld [vmem:[#allocation10 + $0x68] sm:$0xff]  ;;  %v1353_v1 = vld [vmem:[#allocation10 + $0x50] sm:$0xff]  ;;  %v289_v5 = vld [vmem:[%s1618_s4] sm:$0x3] }
  0x49   :  { %669 = vmatpush.bf16.msrb.mxu0 %v998_v60  ;;  %v1022_v60 = vor.u32 %v1295_v55, %v1019_v57  ;;  %v1358_v55 = vld [vmem:[#allocation10 + $0x78] sm:$0xff]  ;;  %v1357_v57 = vld [vmem:[#allocation10 + $0x70] sm:$0xff]  ;;  %v1352_v2 = vld [vmem:[#allocation10 + $0x48] sm:$0xff] }
  0x4a   :  { %682 = vmatpush.bf16.msrb.mxu1 %v1062_v62  ;;  %693 = vmatpush.bf16.msrb.mxu2 %v1142_v28  ;;  %v1335_v62 = vld [vmem:[#allocation8 + $0x1c4] sm:$0xf] }
  0x4b   :  { %706 = vmatpush.bf16.msrb.mxu3 %v1206_v29  ;;  %v1182_v0 = vor.u32 %v1335_v62, %v1179_v63  ;;  %v1327_v28 = vld [vmem:[#allocation8 + $0x184] sm:$0xf]  ;;  %v1147_v29 = vld [vmem:[#allocation8 + $0x188] sm:$0xf0]  ;;  %v1354_v62 = vld [vmem:[#allocation10 + $0x58] sm:$0xff] }
  0x4c   :  { %v1150_v34 = vor.u32 %v1327_v28, %v1147_v29 }
  0x4d   :  { %670 = vmatpush.bf16.msrb.mxu0 %v990_v7  ;;  %v1315_v7 = vld [vmem:[#allocation8 + $0x124] sm:$0xf] }
  0x4e   :  { %683 = vmatpush.bf16.msrb.mxu1 %v1054_v10  ;;  %694 = vmatpush.bf16.msrb.mxu2 %v1134_v38  ;;  %v111_v10 = vld [vmem:[#allocation7] sm:$0xf]  ;;  %v1102_v12 = vor.u32 %v1315_v7, %v1099_v8  ;;  %v291_v7 = vperm.slane %v289_v5, 0 }
  0x4f   :  { %707 = vmatpush.bf16.msrb.mxu3 %v1198_v41  ;;  %v113_v18 = vperm.slane %v111_v10, 0  ;;  %v115_v39 = vperm.slane %v111_v10, 2  ;;  %v116_v40 = vperm.slane %v111_v10, 3 }
  0x51   :  { %671 = vmatpush.bf16.msrb.mxu0 %v982_v20  ;;  %v114_v20 = vperm.slane %v111_v10, 1 }
  0x52   :  { %684 = vmatpush.bf16.msrb.mxu1 %v1046_v24  ;;  %695 = vmatpush.bf16.msrb.mxu2 %v1126_v49  ;;  %v1311_v24 = vld [vmem:[#allocation8 + $0x104] sm:$0xf] }
  0x53   :  { %708 = vmatpush.bf16.msrb.mxu3 %v1190_v52  ;;  %v1086_v32 = vor.u32 %v1311_v24, %v1083_v25  ;;  %v1348_v52 = vld [vmem:[#allocation10 + $0x28] sm:$0xff] }
  0x55   :  { %672 = vmatpush.bf16.msrb.mxu0 %v974_v33 }
  0x56   :  { %685 = vmatpush.bf16.msrb.mxu1 %v1038_v37  ;;  %696 = vmatpush.bf16.msrb.mxu2 %v1118_v61  ;;  %v1355_v61 = vld [vmem:[#allocation10 + $0x60] sm:$0xff] }
  0x57   :  { %709 = vmatpush.bf16.msrb.mxu3 %v1182_v0 }
  0x59   :  { %673 = vmatpush.bf16.msrb.mxu0 %v966_v44 }
  0x5a   :  { %686 = vmatpush.bf16.msrb.mxu1 %v1030_v48  ;;  %697 = vmatpush.bf16.msrb.mxu2 %v1110_v4 }
  0x5b   :  { %710 = vmatpush.bf16.msrb.mxu3 %v1174_v6  ;;  %v1351_v6 = vld [vmem:[#allocation10 + $0x40] sm:$0xff] }
  0x5d   :  { %674 = vmatpush.bf16.msrb.mxu0 %v958_v56  ;;  %v1345_v56 = vld [vmem:[#allocation10 + $0x10] sm:$0xff] }
  0x5e   :  { %687 = vmatpush.bf16.msrb.mxu1 %v1022_v60  ;;  %698 = vmatpush.bf16.msrb.mxu2 %v1102_v12  ;;  %v1343_v60 = vld [vmem:[#allocation10] sm:$0xff] }
  0x5f   :  { %711 = vmatpush.bf16.msrb.mxu3 %v1166_v13 }
  0x62   :  { %699 = vmatpush.bf16.msrb.mxu2 %v1094_v21 }
  0x63   :  { %712 = vmatpush.bf16.msrb.mxu3 %v1158_v22 }
  0x66   :  { %700 = vmatpush.bf16.msrb.mxu2 %v1086_v32 }
  0x67   :  { %713 = vmatpush.bf16.msrb.mxu3 %v1150_v34 }
  0xa4   :  { %v174_v23 = vpop.f32.mrf.mxu2 }
  0xa5   :  { %v175_v26 = vadd.f32 %v174_v23, %v113_v18 }
  0xa7   :  { %v187_v27 = vpop.f32.mrf.mxu3  ;;  %v217_v31 = vmax.f32 %v175_v26, 0.0 }
  0xa8   :  { %v188_v30 = vadd.f32 %v187_v27, %v114_v20  ;;  %v292_v20 = vperm.slane %v289_v5, 1 }
  0xa9   :  { %v221_v35 = vpack.c.bf16 %v217_v31, %v217_v31 }
  0xaa   :  { %v218_v33 = vmax.f32 %v188_v30, 0.0 }
  0xab   :  { %623 = vmatmul.bf16.vlgmr.msra.gmra.mxu0 %v221_v35 }
  0xac   :  { %v222_v36 = vpack.c.bf16 %v218_v33, %v218_v33  ;;  %v176_v37 = vpop.f32.mrf.mxu2  ;;  %855 = vmatpush.bf16.msra.mxu0 %v1350_v50 }
  0xad   :  { %v1371_v37 = vld [vmem:[%s1620_s6] ss:$0 sm:$0xff] }
  0xae   :  { %636 = vmatmul.bf16.vlgmr.msra.gmra.mxu1 %v222_v36 }
  0xaf   :  { %v189_v38 = vpop.f32.mrf.mxu3  ;;  %868 = vmatpush.bf16.msra.mxu1 %v1358_v55 }
  0xb0   :  { %856 = vmatpush.bf16.msra.mxu0 %v1349_v51 }
  0xb3   :  { %869 = vmatpush.bf16.msra.mxu1 %v1357_v57 }
  0xb4   :  { %v200_v41 = vpop.f32.mrf.mxu2  ;;  %857 = vmatpush.bf16.msra.mxu0 %v1348_v52 }
  0xb5   :  { %v201_v42 = vadd.f32 %v200_v41, %v115_v39 }
  0xb7   :  { %v213_v19 = vpop.f32.mrf.mxu3  ;;  %v219_v44 = vmax.f32 %v201_v42, 0.0  ;;  %870 = vmatpush.bf16.msra.mxu1 %v1356_v59 }
  0xb8   :  { %v214_v43 = vadd.f32 %v213_v19, %v116_v40  ;;  %858 = vmatpush.bf16.msra.mxu0 %v1347_v53 }
  0xb9   :  { %v223_v46 = vpack.c.bf16 %v219_v44, %v219_v44 }
  0xba   :  { %v220_v45 = vmax.f32 %v214_v43, 0.0 }
  0xbb   :  { %649 = vmatmul.bf16.vlgmr.msra.gmra.mxu2 %v223_v46  ;;  %675 = vmatmul.bf16.vlgmr.msrb.gmra.mxu0 %v221_v35 }
  0xbc   :  { %v224_v47 = vpack.c.bf16 %v220_v45, %v220_v45  ;;  %v202_v48 = vpop.f32.mrf.mxu2  ;;  %859 = vmatpush.bf16.msra.mxu0 %v1346_v54  ;;  %871 = vmatpush.bf16.msra.mxu1 %v1355_v61 }
  0xbe   :  { %662 = vmatmul.bf16.vlgmr.msra.gmra.mxu3 %v224_v47  ;;  %688 = vmatmul.bf16.vlgmr.msrb.gmra.mxu1 %v222_v36  ;;  %v881_v36 = vlaneseq }
  0xbf   :  { %v215_v49 = vpop.f32.mrf.mxu3 }
  0xc0   :  { %860 = vmatpush.bf16.msra.mxu0 %v1345_v56  ;;  %872 = vmatpush.bf16.msra.mxu1 %v1354_v62  ;;  %v882_v38 = vand.u32 127, %v881_v36 }
  0xc2   :  { %vm883_vm1 = vcmp.lt.s32.totalorder %v882_v38, 2 }
  0xc4   :  { %861 = vmatpush.bf16.msra.mxu0 %v1344_v58  ;;  %873 = vmatpush.bf16.msra.mxu1 %v1353_v1 }
  0xc8   :  { %862 = vmatpush.bf16.msra.mxu0 %v1343_v60  ;;  %874 = vmatpush.bf16.msra.mxu1 %v1352_v2 }
  0xcb   :  { %701 = vmatmul.bf16.vlgmr.msrb.gmra.mxu2 %v223_v46 }
  0xcc   :  { %875 = vmatpush.bf16.msra.mxu1 %v1351_v6 }
  0xce   :  { %714 = vmatmul.bf16.vlgmr.msrb.gmra.mxu3 %v224_v47 }
 0x128   :  { %v624_v63 = vpop.f32.mrf.mxu0 }
 0x129   :  { %v625_v9 = vadd.f32 %v624_v63, %v291_v7 }
 0x12b   :  { %v637_v0 = vpop.f32.mrf.mxu1 }
 0x12c   :  { %v638_v11 = vadd.f32 %v637_v0, %v625_v9 }
 0x130   :  { %v626_v3 = vpop.f32.mrf.mxu0 }
 0x133   :  { %v639_v4 = vpop.f32.mrf.mxu1 }
 0x138   :  { %v676_v8 = vpop.f32.mrf.mxu0 }
 0x139   :  { %v677_v24 = vadd.f32 %v676_v8, %v292_v20 }
 0x13b   :  { %v689_v10 = vpop.f32.mrf.mxu1 }
 0x13c   :  { %v690_v25 = vadd.f32 %v689_v10, %v677_v24 }
 0x13e   :  { %v650_v12 = vpop.f32.mrf.mxu2 }
 0x13f   :  { %v651_v13 = vadd.f32 %v650_v12, %v638_v11 }
 0x140   :  { %v678_v15 = vpop.f32.mrf.mxu0 }
 0x141   :  { %v663_v14 = vpop.f32.mrf.mxu3 }
 0x142   :  { %v664_v16 = vadd.f32 %v663_v14, %v651_v13 }
 0x143   :  { %v691_v17 = vpop.f32.mrf.mxu1 }
 0x144   :  { %v719_v18 = vmax.f32 %v664_v16, 0.0 }
 0x146   :  { %v721_v21 = vpack.c.bf16 %v719_v18, %v719_v18  ;;  %v652_v22 = vpop.f32.mrf.mxu2 }
 0x148   :  { %863 = vmatmul.bf16.vlgmr.msra.gmra.mxu0 %v721_v21 }
 0x149   :  { %v665_v23 = vpop.f32.mrf.mxu3 }
 0x14e   :  { %v702_v26 = vpop.f32.mrf.mxu2 }
 0x14f   :  { %v703_v27 = vadd.f32 %v702_v26, %v690_v25 }
 0x151   :  { %v715_v28 = vpop.f32.mrf.mxu3 }
 0x152   :  { %v716_v29 = vadd.f32 %v715_v28, %v703_v27 }
 0x154   :  { %v720_v30 = vmax.f32 %v716_v29, 0.0 }
 0x156   :  { %v722_v31 = vpack.c.bf16 %v720_v30, %v720_v30  ;;  %v704_v32 = vpop.f32.mrf.mxu2 }
 0x158   :  { %876 = vmatmul.bf16.vlgmr.msra.gmra.mxu1 %v722_v31 }
 0x159   :  { %v717_v33 = vpop.f32.mrf.mxu3 }
 0x1c5   :  { %v864_v34 = vpop.f32.mrf.mxu0 }
 0x1c6   :  { %v865_v39 = vadd.f32 %v1371_v37, %v864_v34 }
 0x1cd   :  { %v866_v35 = vpop.f32.mrf.mxu0 }
 0x1d5   :  { %v877_v40 = vpop.f32.mrf.mxu1 }
 0x1d6   :  { %v878_v41 = vadd.f32 %v877_v40, %v865_v39 }
 0x1d8   :  { %v884_v42 = vsel %vm883_vm1, %v878_v41, -inf }
 0x1d9   :  { %885 = vmax.xlane.f32.xlu0 %v884_v42 }
 0x1dd   :  { %v879_v19 = vpop.f32.mrf.mxu1 }
 0x24c   :  { %v886_v43 = vpop.xlane.xlu0 %885 }
 0x24d   :  { %v887_v44 = vsub.f32 %v884_v42, %v886_v43 }
 0x24f   :  { %v888_v45 = vmul.f32 1.442695, %v887_v44 }
 0x251   :  { %1372 = vpow2.f32 %v888_v45 }
 0x257   :  { %v1373_v46 = vpop.eup %1372 }
 0x258   :  { %890 = vadd.xlane.f32.xlu0 %v1373_v46 }
 0x2cb   :  { %v891_v47 = vpop.xlane.xlu0 %890 }
 0x2cc   :  { %1374 = vlog2.f32 %v891_v47 }
 0x2d2   :  { %v1375_v48 = vpop.eup %1374 }
 0x2d3   :  { %v893_v49 = vmul.f32 0.6931472, %v1375_v48 }
 0x2d5   :  { %v894_v50 = vsub.f32 %v887_v44, %v893_v49 }
 0x2d7   :  { %895 = vst [vmem:[#allocation11] sm:$0xff] %v894_v50 }
 0x2d8   :  { %906 = dma.vmem_to_hbm [thread:$0]  %s902_s8, 128, %s904_s10, [#allocation4]  }
 0x2d9   :  { %1526 = dma.done.wait [#allocation4], 128  }
 0x2da   :  { %1527 = vsyncadd [#allocation4], 4294967168 }
 0x2db   :  { %911 = vsyncpa [#allocation3], 1 }
 0x2dc   :  { %912 = vsyncpa [#allocation6], 1 }
 0x2dd   :  { %913 = vsyncpa [#allocation9], 1 }
 0x2de   :  { %914 = vsyncpa [#allocation4], 1 }

</bundles_post_ra>
